<compile_context>
chip_gen: v7x
topology: tpu7x:2x2x1
jax: 0.10.0
libtpu: 0.0.40
codegen_flags: <defaults>
</compile_context>

<pallas_src>
import functools

import jax
import jax.numpy as jnp
from jax import lax
from jax.experimental import pallas as pl
from jax.experimental.pallas import tpu as pltpu

_ACC_W = 128          # lane width of the narrow running-sum accumulators
_MAX_TILE = 32768     # upper bound on the HW tile (lanes) per grid step


def _bmloss_kernel(out_new_ref, out_old_ref, b_ref, partial_ref,
                   acc_bx, acc_xx, acc_cy, acc_yy, acc_b, acc_bb,
                   *, ch_start):
    # Grid = (shard, batch, hw_tile).  The shard axis is leading and
    # "parallel": on single-TensorCore chips it is the slowest serial loop,
    # on 2-TC chips it is split across cores (each with private scratch), so
    # the (batch, hw_tile)-only first/last guards correctly bracket exactly
    # one shard's accumulation pass in both cases.
    n = pl.program_id(1)
    t = pl.program_id(2)
    first = jnp.logical_and(n == 0, t == 0)
    last = jnp.logical_and(n == pl.num_programs(1) - 1,
                           t == pl.num_programs(2) - 1)

    c_new = acc_bx.shape[1]
    acc_w = acc_bx.shape[2]
    t_hw = b_ref.shape[2]
    n_chunks = t_hw // acc_w

    @pl.when(first)
    def _init():
        acc_bx[...] = jnp.zeros_like(acc_bx)
        acc_xx[...] = jnp.zeros_like(acc_xx)
        acc_cy[...] = jnp.zeros_like(acc_cy)
        acc_yy[...] = jnp.zeros_like(acc_yy)
        acc_b[...] = jnp.zeros_like(acc_b)
        acc_bb[...] = jnp.zeros_like(acc_bb)

    def load_x(off):
        if ch_start == 0:
            xk = out_new_ref[:, :, pl.ds(off, acc_w)]
        else:
            # Fallback path: block carries all C channels; slice the Ref
            # (static channel offset), not the loaded value.
            xk = out_new_ref[:, pl.ds(ch_start, c_new), pl.ds(off, acc_w)]
        return xk.astype(jnp.float32)

    def body(k, carry):
        p_bx, p_xx, p_cy, p_yy, p_b, p_bb = carry
        off = pl.multiple_of(k * acc_w, acc_w)
        xk = load_x(off)                                             # (1,C_new,W)
        yk = out_old_ref[:, :, pl.ds(off, acc_w)].astype(jnp.float32)  # (1,C_old,W)
        bk = b_ref[:, :, pl.ds(off, acc_w)].astype(jnp.float32)        # (1,1,W)
        ck = 1.0 - bk                                                # once per chunk
        return (p_bx + bk * xk,
                p_xx + xk * xk,
                p_cy + ck * yk,
                p_yy + yk * yk,
                p_b + bk,
                p_bb + bk * bk)

    init = (jnp.zeros(acc_bx.shape, jnp.float32),
            jnp.zeros(acc_xx.shape, jnp.float32),
            jnp.zeros(acc_cy.shape, jnp.float32),
            jnp.zeros(acc_yy.shape, jnp.float32),
            jnp.zeros(acc_b.shape, jnp.float32),
            jnp.zeros(acc_bb.shape, jnp.float32))
    p_bx, p_xx, p_cy, p_yy, p_b, p_bb = lax.fori_loop(
        0, n_chunks, body, init, unroll=min(8, n_chunks))

    # Single narrow read-modify-write of the VMEM accumulators per grid step.
    acc_bx[...] += p_bx
    acc_xx[...] += p_xx
    acc_cy[...] += p_cy
    acc_yy[...] += p_yy
    acc_b[...] += p_b
    acc_bb[...] += p_bb

    @pl.when(last)
    def _finish():
        s_bx = jnp.sum(acc_bx[...])
        s_xx = jnp.sum(acc_xx[...])
        s_cy = jnp.sum(acc_cy[...])
        s_yy = jnp.sum(acc_yy[...])
        s_b = jnp.sum(acc_b[...])
        s_bb = jnp.sum(acc_bb[...])
        sub = lax.broadcasted_iota(jnp.int32, partial_ref.shape, 1)
        lane = lax.broadcasted_iota(jnp.int32, partial_ref.shape, 2)
        vals = jnp.where(lane == 0, s_bx,
               jnp.where(lane == 1, s_xx,
               jnp.where(lane == 2, s_cy,
               jnp.where(lane == 3, s_yy,
               jnp.where(lane == 4, s_b,
               jnp.where(lane == 5, s_bb, 0.0))))))
        partial_ref[...] = jnp.where(sub == 0, vals, 0.0)


def _tpu_generation():
    """(vmem_capacity_bytes, has_two_tensorcores). Conservative on failure."""
    vmem_bytes = None
    try:
        vmem_bytes = int(pltpu.get_tpu_info().vmem_capacity_bytes)
    except Exception:
        vmem_bytes = None
    if not vmem_bytes:
        vmem_bytes = 64 * 1024 * 1024        # conservative: v7x per-TC VMEM
    try:
        kind = jax.devices()[0].device_kind.lower()
    except Exception:
        kind = ""
    two_tc = "v7" in kind                    # v7x: 2 TensorCores per chip
    if two_tc:
        vmem_bytes = min(vmem_bytes, 64 * 1024 * 1024)   # per-TC budget
    return vmem_bytes, two_tc


def _pick_hw_tile(hw_pad, per_lane_bytes, budget, max_tile, want_even_tiles):
    """Largest lane-dense (multiple of 128) divisor of hw_pad within budget.

    Returns (tile, tiles_count_is_even). Prefers an even tile count only when
    requested (2-TensorCore chips), so single-core chips get the largest tile.
    """
    cap = (budget // max(per_lane_bytes, 1)) // 128 * 128
    cap = max(128, min(cap, max_tile, hw_pad))
    best, best_even = 128, None
    t = 128
    while t <= cap:
        if hw_pad % t == 0:
            best = t
            if (hw_pad // t) % 2 == 0:
                best_even = t
        t += 128
    if want_even_tiles and best_even is not None:
        return best_even, True
    return best, (hw_pad // best) % 2 == 0


@functools.partial(jax.jit, static_argnums=(3,))
def bm_loss(output, output_old, B_i, old_classes):
    """Pallas implementation of BMloss.forward. Returns a float32 scalar."""
    N, C, H, W = output.shape
    C_old = output_old.shape[1]
    C_new = C - old_classes
    assert C_new > 0
    HW = H * W

    # Free flatten-reshapes; dtype stays native (upcast to f32 on-VPU in-kernel).
    out_full = output.reshape(N, C, HW)
    out_old = output_old.reshape(N, C_old, HW)
    b = B_i.reshape(N, 1, HW)

    # Zero-pad HW to a multiple of 128: exact for all six sums (padded b and
    # activations contribute 0); the (1-b)^2 count below uses the unpadded HW.
    HW_pad = ((HW + 127) // 128) * 128
    if HW_pad != HW:
        pad = ((0, 0), (0, 0), (0, HW_pad - HW))
        out_full = jnp.pad(out_full, pad)
        out_old = jnp.pad(out_old, pad)
        b = jnp.pad(b, pad)

    isz_x = jnp.dtype(output.dtype).itemsize
    isz_y = jnp.dtype(output_old.dtype).itemsize
    isz_b = jnp.dtype(B_i.dtype).itemsize

    # ---- new-class channel fetch strategy -------------------------------
    sub_mult = {4: 8, 2: 16, 1: 32}.get(isz_x, 8)   # sublane alignment per dtype
    if old_classes == 0:
        x_in, x_c_dma, x_ch_block, ch_start = out_full, C, 0, 0
    elif old_classes % C_new == 0 and C_new % sub_mult == 0:
        # Pure Blocked channel offset: DMA only the C_new new-class channels.
        x_in, x_c_dma, x_ch_block, ch_start = out_full, C_new, old_classes // C_new, 0
    elif old_classes > 2 * C_new:
        # One-time slice copy is cheaper than re-streaming old channels per step.
        x_in, x_c_dma, x_ch_block, ch_start = out_full[:, old_classes:, :], C_new, 0, 0
    else:
        # TODO(synk): express this static channel offset with a pl.Element
        # channel dim to avoid DMAing the old-class channels here as well.
        x_in, x_c_dma, x_ch_block, ch_start = out_full, C, 0, old_classes

    # ---- generation-aware tile / VMEM sizing -----------------------------
    vmem_bytes, two_tc = _tpu_generation()
    if vmem_bytes >= 96 * 1024 * 1024:          # v5e / v6e (128 MiB VMEM)
        tile_budget = 32 * 1024 * 1024
        vmem_limit = 64 * 1024 * 1024
    else:                                        # v7x (64 MiB per TC)
        tile_budget = 20 * 1024 * 1024
        vmem_limit = 48 * 1024 * 1024
    vmem_limit = min(vmem_limit, max(8 * 1024 * 1024, vmem_bytes * 3 // 4))
    tile_budget = min(tile_budget, vmem_limit // 2)

    # Double-buffered input bytes per HW lane (accumulators are now O(128) wide).
    per_lane = 2 * (x_c_dma * isz_x + C_old * isz_y + isz_b)
    t_hw, tiles_even = _pick_hw_tile(HW_pad, per_lane, tile_budget,
                                     max_tile=_MAX_TILE, want_even_tiles=two_tc)
    assert HW_pad % t_hw == 0
    n_tiles = HW_pad // t_hw
    # Shard axis only pays off with 2 TensorCores; it is pure loop overhead on
    # single-core chips (v5e / v6e).
    num_shards = 2 if (two_tc and tiles_even and n_tiles >= 2) else 1
    tiles_per_shard = n_tiles // num_shards

    kernel = functools.partial(_bmloss_kernel, ch_start=ch_start)

    partials = pl.pallas_call(
        kernel,
        out_shape=jax.ShapeDtypeStruct((num_shards, 8, 128), jnp.float32),
        grid_spec=pltpu.PrefetchScalarGridSpec(
            num_scalar_prefetch=0,
            grid=(num_shards, N, tiles_per_shard),
            in_specs=[
                pl.BlockSpec((1, x_c_dma, t_hw),
                             lambda s, n, t: (n, x_ch_block,
                                              s * tiles_per_shard + t)),
                pl.BlockSpec((1, C_old, t_hw),
                             lambda s, n, t: (n, 0, s * tiles_per_shard + t)),
                pl.BlockSpec((1, 1, t_hw),
                             lambda s, n, t: (n, 0, s * tiles_per_shard + t)),
            ],
            out_specs=pl.BlockSpec((1, 8, 128), lambda s, n, t: (s, 0, 0)),
            scratch_shapes=[
                pltpu.VMEM((1, C_new, _ACC_W), jnp.float32),  # sum b*x
                pltpu.VMEM((1, C_new, _ACC_W), jnp.float32),  # sum x*x
                pltpu.VMEM((1, C_old, _ACC_W), jnp.float32),  # sum (1-b)*y
                pltpu.VMEM((1, C_old, _ACC_W), jnp.float32),  # sum y*y
                pltpu.VMEM((1, 1, _ACC_W), jnp.float32),      # sum b
                pltpu.VMEM((1, 1, _ACC_W), jnp.float32),      # sum b*b
            ],
        ),
        compiler_params=pltpu.CompilerParams(
            dimension_semantics=("parallel", "arbitrary", "arbitrary"),
            vmem_limit_bytes=vmem_limit,
        ),
    )(x_in, out_old, b)

    # Tiny final combine across shards + the divisions, in plain JAX.
    p = jnp.sum(partials, axis=(0, 1))
    s_bx, s_xx, s_cy, s_yy, s_b, s_bb = p[0], p[1], p[2], p[3], p[4], p[5]
    count_b = jnp.float32(N * HW)                 # unpadded element count
    s_cc = count_b - 2.0 * s_b + s_bb             # sum((1 - b)^2), derived
    loss_new = 1.0 - 2.0 * s_bx / (s_bb + s_xx)
    loss_old = 1.0 - 2.0 * s_cy / (s_cc + s_yy)
    return loss_new + loss_old


def bm_loss_reference(output, output_old, B_i, old_classes):
    """Pure-JAX reference mirroring the PyTorch module exactly."""
    out = output[:, old_classes:, :, :]
    bi = B_i[:, None, :, :]
    loss_new = 1.0 - 2.0 * jnp.sum(bi * out) / (jnp.sum(bi ** 2) + jnp.sum(out ** 2))
    bc = 1.0 - bi
    loss_old = 1.0 - 2.0 * jnp.sum(bc * output_old) / (jnp.sum(bc ** 2) + jnp.sum(output_old ** 2))
    return loss_new + loss_old


if __name__ == "__main__":
    key = jax.random.PRNGKey(0)
    k1, k2, k3 = jax.random.split(key, 3)

    N, C, H, W = 2, 4, 16, 16
    old_classes = 2
    C_old = old_classes

    output = jax.random.normal(k1, (N, C, H, W), dtype=jnp.float32)
    output_old = jax.random.normal(k2, (N, C_old, H, W), dtype=jnp.float32)
    B_i = jax.nn.sigmoid(jax.random.normal(k3, (N, H, W), dtype=jnp.float32))

    loss = bm_loss(output, output_old, B_i, old_classes)
    loss = jax.block_until_ready(loss)

    ref = bm_loss_reference(output, output_old, B_i, old_classes)
    ref = jax.block_until_ready(ref)

    assert jnp.allclose(loss, ref, rtol=1e-4, atol=1e-5), (loss, ref)
    print("KERNEL_OK")
</pallas_src>

<mosaic_0001>
module attributes {stable_mosaic.version = 11 : i64} {
  func.func @_bmloss_kernel(%arg0: i32, %arg1: i32, %arg2: i32, %arg3: memref<1x4x256xf32, #tpu.memory_space<vmem>>, %arg4: memref<1x2x256xf32, #tpu.memory_space<vmem>>, %arg5: memref<1x1x256xf32, #tpu.memory_space<vmem>>, %arg6: memref<1x8x128xf32, #tpu.memory_space<vmem>>, %arg7: memref<1x2x128xf32, #tpu.memory_space<vmem>>, %arg8: memref<1x2x128xf32, #tpu.memory_space<vmem>>, %arg9: memref<1x2x128xf32, #tpu.memory_space<vmem>>, %arg10: memref<1x2x128xf32, #tpu.memory_space<vmem>>, %arg11: memref<1x1x128xf32, #tpu.memory_space<vmem>>, %arg12: memref<1x1x128xf32, #tpu.memory_space<vmem>>) attributes {dimension_semantics = [#tpu.dimension_semantics<parallel>, #tpu.dimension_semantics<arbitrary>, #tpu.dimension_semantics<arbitrary>], iteration_bounds = array<i64: 1, 2, 1>, scalar_prefetch = 0 : i64, scratch_operands = 6 : i64, tpu.core_type = #tpu.core_type<tc>, window_params = [{transform_indices = @transform_0, window_bounds = array<i64: 1, 4, 256>}, {transform_indices = @transform_1, window_bounds = array<i64: 1, 2, 256>}, {transform_indices = @transform_2, window_bounds = array<i64: 1, 1, 256>}, {transform_indices = @transform_3, window_bounds = array<i64: 1, 8, 128>}]} {
    %c0_i32 = arith.constant 0 : i32
    %0 = arith.cmpi eq, %arg1, %c0_i32 : i32
    %c0_i32_0 = arith.constant 0 : i32
    %1 = arith.cmpi eq, %arg2, %c0_i32_0 : i32
    %2 = arith.andi %0, %1 : i1
    %c1_i32 = arith.constant 1 : i32
    %3 = arith.cmpi eq, %arg1, %c1_i32 : i32
    %c0_i32_1 = arith.constant 0 : i32
    %4 = arith.cmpi eq, %arg2, %c0_i32_1 : i32
    %5 = arith.andi %3, %4 : i1
    %6 = arith.extui %2 : i1 to i32
    %c0_i32_2 = arith.constant 0 : i32
    %7 = arith.cmpi ne, %6, %c0_i32_2 : i32
    scf.if %7 {
      %cst_60 = arith.constant 0.000000e+00 : f32
      %80 = vector.broadcast %cst_60 : f32 to vector<1x2x128xf32>
      %c0_61 = arith.constant 0 : index
      %c0_62 = arith.constant 0 : index
      %c0_63 = arith.constant 0 : index
      %81 = vector.load %arg7[%c0_61, %c0_62, %c0_63] : memref<1x2x128xf32, #tpu.memory_space<vmem>>, vector<1x2x128xf32>
      tpu.vector_store %arg7[%c0_61, %c0_62, %c0_63], %80 {strides = array<i32>} : memref<1x2x128xf32, #tpu.memory_space<vmem>>, vector<1x2x128xf32>,
      %cst_64 = arith.constant 0.000000e+00 : f32
      %82 = vector.broadcast %cst_64 : f32 to vector<1x2x128xf32>
      %c0_65 = arith.constant 0 : index
      %c0_66 = arith.constant 0 : index
      %c0_67 = arith.constant 0 : index
      %83 = vector.load %arg8[%c0_65, %c0_66, %c0_67] : memref<1x2x128xf32, #tpu.memory_space<vmem>>, vector<1x2x128xf32>
      tpu.vector_store %arg8[%c0_65, %c0_66, %c0_67], %82 {strides = array<i32>} : memref<1x2x128xf32, #tpu.memory_space<vmem>>, vector<1x2x128xf32>,
      %cst_68 = arith.constant 0.000000e+00 : f32
      %84 = vector.broadcast %cst_68 : f32 to vector<1x2x128xf32>
      %c0_69 = arith.constant 0 : index
      %c0_70 = arith.constant 0 : index
      %c0_71 = arith.constant 0 : index
      %85 = vector.load %arg9[%c0_69, %c0_70, %c0_71] : memref<1x2x128xf32, #tpu.memory_space<vmem>>, vector<1x2x128xf32>
      tpu.vector_store %arg9[%c0_69, %c0_70, %c0_71], %84 {strides = array<i32>} : memref<1x2x128xf32, #tpu.memory_space<vmem>>, vector<1x2x128xf32>,
      %cst_72 = arith.constant 0.000000e+00 : f32
      %86 = vector.broadcast %cst_72 : f32 to vector<1x2x128xf32>
      %c0_73 = arith.constant 0 : index
      %c0_74 = arith.constant 0 : index
      %c0_75 = arith.constant 0 : index
      %87 = vector.load %arg10[%c0_73, %c0_74, %c0_75] : memref<1x2x128xf32, #tpu.memory_space<vmem>>, vector<1x2x128xf32>
      tpu.vector_store %arg10[%c0_73, %c0_74, %c0_75], %86 {strides = array<i32>} : memref<1x2x128xf32, #tpu.memory_space<vmem>>, vector<1x2x128xf32>,
      %cst_76 = arith.constant 0.000000e+00 : f32
      %88 = vector.broadcast %cst_76 : f32 to vector<1x1x128xf32>
      %c0_77 = arith.constant 0 : index
      %c0_78 = arith.constant 0 : index
      %c0_79 = arith.constant 0 : index
      %89 = vector.load %arg11[%c0_77, %c0_78, %c0_79] : memref<1x1x128xf32, #tpu.memory_space<vmem>>, vector<1x1x128xf32>
      tpu.vector_store %arg11[%c0_77, %c0_78, %c0_79], %88 {strides = array<i32>} : memref<1x1x128xf32, #tpu.memory_space<vmem>>, vector<1x1x128xf32>,
      %cst_80 = arith.constant 0.000000e+00 : f32
      %90 = vector.broadcast %cst_80 : f32 to vector<1x1x128xf32>
      %c0_81 = arith.constant 0 : index
      %c0_82 = arith.constant 0 : index
      %c0_83 = arith.constant 0 : index
      %91 = vector.load %arg12[%c0_81, %c0_82, %c0_83] : memref<1x1x128xf32, #tpu.memory_space<vmem>>, vector<1x1x128xf32>
      tpu.vector_store %arg12[%c0_81, %c0_82, %c0_83], %90 {strides = array<i32>} : memref<1x1x128xf32, #tpu.memory_space<vmem>>, vector<1x1x128xf32>,
    } else {
    }
    %cst = arith.constant 0.000000e+00 : f32
    %8 = vector.broadcast %cst : f32 to vector<1x2x128xf32>
    %cst_3 = arith.constant 0.000000e+00 : f32
    %9 = vector.broadcast %cst_3 : f32 to vector<1x2x128xf32>
    %cst_4 = arith.constant 0.000000e+00 : f32
    %10 = vector.broadcast %cst_4 : f32 to vector<1x2x128xf32>
    %cst_5 = arith.constant 0.000000e+00 : f32
    %11 = vector.broadcast %cst_5 : f32 to vector<1x2x128xf32>
    %cst_6 = arith.constant 0.000000e+00 : f32
    %12 = vector.broadcast %cst_6 : f32 to vector<1x1x128xf32>
    %cst_7 = arith.constant 0.000000e+00 : f32
    %13 = vector.broadcast %cst_7 : f32 to vector<1x1x128xf32>
    %c0_i32_8 = arith.constant 0 : i32
    %c128_i32 = arith.constant 128 : i32
    %14 = arith.muli %c0_i32_8, %c128_i32 : i32
    %15 = tpu.assume_multiple %14, 128 : i32
    %c0 = arith.constant 0 : index
    %c2 = arith.constant 2 : index
    %16 = arith.index_cast %15 : i32 to index
    %17 = vector.load %arg3[%c0, %c2, %16] : memref<1x4x256xf32, #tpu.memory_space<vmem>>, vector<1x2x128xf32>
    %c0_9 = arith.constant 0 : index
    %c0_10 = arith.constant 0 : index
    %18 = arith.index_cast %15 : i32 to index
    %19 = vector.load %arg4[%c0_9, %c0_10, %18] : memref<1x2x256xf32, #tpu.memory_space<vmem>>, vector<1x2x128xf32>
    %c0_11 = arith.constant 0 : index
    %c0_12 = arith.constant 0 : index
    %20 = arith.index_cast %15 : i32 to index
    %21 = vector.load %arg5[%c0_11, %c0_12, %20] : memref<1x1x256xf32, #tpu.memory_space<vmem>>, vector<1x1x128xf32>
    %cst_13 = arith.constant 1.000000e+00 : f32
    %22 = vector.broadcast %cst_13 : f32 to vector<1x1x128xf32>
    %23 = arith.subf %22, %21 : vector<1x1x128xf32>
    %24 = vector.broadcast %21 : vector<1x1x128xf32> to vector<1x2x128xf32>
    %25 = arith.mulf %24, %17 : vector<1x2x128xf32>
    %26 = arith.addf %8, %25 : vector<1x2x128xf32>
    %27 = arith.mulf %17, %17 : vector<1x2x128xf32>
    %28 = arith.addf %9, %27 : vector<1x2x128xf32>
    %29 = vector.broadcast %23 : vector<1x1x128xf32> to vector<1x2x128xf32>
    %30 = arith.mulf %29, %19 : vector<1x2x128xf32>
    %31 = arith.addf %10, %30 : vector<1x2x128xf32>
    %32 = arith.mulf %19, %19 : vector<1x2x128xf32>
    %33 = arith.addf %11, %32 : vector<1x2x128xf32>
    %34 = arith.addf %12, %21 : vector<1x1x128xf32>
    %35 = arith.mulf %21, %21 : vector<1x1x128xf32>
    %36 = arith.addf %13, %35 : vector<1x1x128xf32>
    %c1_i32_14 = arith.constant 1 : i32
    %c128_i32_15 = arith.constant 128 : i32
    %37 = arith.muli %c1_i32_14, %c128_i32_15 : i32
    %38 = tpu.assume_multiple %37, 128 : i32
    %c0_16 = arith.constant 0 : index
    %c2_17 = arith.constant 2 : index
    %39 = arith.index_cast %38 : i32 to index
    %40 = vector.load %arg3[%c0_16, %c2_17, %39] : memref<1x4x256xf32, #tpu.memory_space<vmem>>, vector<1x2x128xf32>
    %c0_18 = arith.constant 0 : index
    %c0_19 = arith.constant 0 : index
    %41 = arith.index_cast %38 : i32 to index
    %42 = vector.load %arg4[%c0_18, %c0_19, %41] : memref<1x2x256xf32, #tpu.memory_space<vmem>>, vector<1x2x128xf32>
    %c0_20 = arith.constant 0 : index
    %c0_21 = arith.constant 0 : index
    %43 = arith.index_cast %38 : i32 to index
    %44 = vector.load %arg5[%c0_20, %c0_21, %43] : memref<1x1x256xf32, #tpu.memory_space<vmem>>, vector<1x1x128xf32>
    %cst_22 = arith.constant 1.000000e+00 : f32
    %45 = vector.broadcast %cst_22 : f32 to vector<1x1x128xf32>
    %46 = arith.subf %45, %44 : vector<1x1x128xf32>
    %47 = vector.broadcast %44 : vector<1x1x128xf32> to vector<1x2x128xf32>
    %48 = arith.mulf %47, %40 : vector<1x2x128xf32>
    %49 = arith.addf %26, %48 : vector<1x2x128xf32>
    %50 = arith.mulf %40, %40 : vector<1x2x128xf32>
    %51 = arith.addf %28, %50 : vector<1x2x128xf32>
    %52 = vector.broadcast %46 : vector<1x1x128xf32> to vector<1x2x128xf32>
    %53 = arith.mulf %52, %42 : vector<1x2x128xf32>
    %54 = arith.addf %31, %53 : vector<1x2x128xf32>
    %55 = arith.mulf %42, %42 : vector<1x2x128xf32>
    %56 = arith.addf %33, %55 : vector<1x2x128xf32>
    %57 = arith.addf %34, %44 : vector<1x1x128xf32>
    %58 = arith.mulf %44, %44 : vector<1x1x128xf32>
    %59 = arith.addf %36, %58 : vector<1x1x128xf32>
    %c2_i32 = arith.constant 2 : i32
    %c0_23 = arith.constant 0 : index
    %c0_24 = arith.constant 0 : index
    %c0_25 = arith.constant 0 : index
    %60 = vector.load %arg7[%c0_23, %c0_24, %c0_25] : memref<1x2x128xf32, #tpu.memory_space<vmem>>, vector<1x2x128xf32>
    %61 = arith.addf %60, %49 : vector<1x2x128xf32>
    %c0_26 = arith.constant 0 : index
    %c0_27 = arith.constant 0 : index
    %c0_28 = arith.constant 0 : index
    %62 = vector.load %arg7[%c0_26, %c0_27, %c0_28] : memref<1x2x128xf32, #tpu.memory_space<vmem>>, vector<1x2x128xf32>
    tpu.vector_store %arg7[%c0_26, %c0_27, %c0_28], %61 {strides = array<i32>} : memref<1x2x128xf32, #tpu.memory_space<vmem>>, vector<1x2x128xf32>,
    %c0_29 = arith.constant 0 : index
    %c0_30 = arith.constant 0 : index
    %c0_31 = arith.constant 0 : index
    %63 = vector.load %arg8[%c0_29, %c0_30, %c0_31] : memref<1x2x128xf32, #tpu.memory_space<vmem>>, vector<1x2x128xf32>
    %64 = arith.addf %63, %51 : vector<1x2x128xf32>
    %c0_32 = arith.constant 0 : index
    %c0_33 = arith.constant 0 : index
    %c0_34 = arith.constant 0 : index
    %65 = vector.load %arg8[%c0_32, %c0_33, %c0_34] : memref<1x2x128xf32, #tpu.memory_space<vmem>>, vector<1x2x128xf32>
    tpu.vector_store %arg8[%c0_32, %c0_33, %c0_34], %64 {strides = array<i32>} : memref<1x2x128xf32, #tpu.memory_space<vmem>>, vector<1x2x128xf32>,
    %c0_35 = arith.constant 0 : index
    %c0_36 = arith.constant 0 : index
    %c0_37 = arith.constant 0 : index
    %66 = vector.load %arg9[%c0_35, %c0_36, %c0_37] : memref<1x2x128xf32, #tpu.memory_space<vmem>>, vector<1x2x128xf32>
    %67 = arith.addf %66, %54 : vector<1x2x128xf32>
    %c0_38 = arith.constant 0 : index
    %c0_39 = arith.constant 0 : index
    %c0_40 = arith.constant 0 : index
    %68 = vector.load %arg9[%c0_38, %c0_39, %c0_40] : memref<1x2x128xf32, #tpu.memory_space<vmem>>, vector<1x2x128xf32>
    tpu.vector_store %arg9[%c0_38, %c0_39, %c0_40], %67 {strides = array<i32>} : memref<1x2x128xf32, #tpu.memory_space<vmem>>, vector<1x2x128xf32>,
    %c0_41 = arith.constant 0 : index
    %c0_42 = arith.constant 0 : index
    %c0_43 = arith.constant 0 : index
    %69 = vector.load %arg10[%c0_41, %c0_42, %c0_43] : memref<1x2x128xf32, #tpu.memory_space<vmem>>, vector<1x2x128xf32>
    %70 = arith.addf %69, %56 : vector<1x2x128xf32>
    %c0_44 = arith.constant 0 : index
    %c0_45 = arith.constant 0 : index
    %c0_46 = arith.constant 0 : index
    %71 = vector.load %arg10[%c0_44, %c0_45, %c0_46] : memref<1x2x128xf32, #tpu.memory_space<vmem>>, vector<1x2x128xf32>
    tpu.vector_store %arg10[%c0_44, %c0_45, %c0_46], %70 {strides = array<i32>} : memref<1x2x128xf32, #tpu.memory_space<vmem>>, vector<1x2x128xf32>,
    %c0_47 = arith.constant 0 : index
    %c0_48 = arith.constant 0 : index
    %c0_49 = arith.constant 0 : index
    %72 = vector.load %arg11[%c0_47, %c0_48, %c0_49] : memref<1x1x128xf32, #tpu.memory_space<vmem>>, vector<1x1x128xf32>
    %73 = arith.addf %72, %57 : vector<1x1x128xf32>
    %c0_50 = arith.constant 0 : index
    %c0_51 = arith.constant 0 : index
    %c0_52 = arith.constant 0 : index
    %74 = vector.load %arg11[%c0_50, %c0_51, %c0_52] : memref<1x1x128xf32, #tpu.memory_space<vmem>>, vector<1x1x128xf32>
    tpu.vector_store %arg11[%c0_50, %c0_51, %c0_52], %73 {strides = array<i32>} : memref<1x1x128xf32, #tpu.memory_space<vmem>>, vector<1x1x128xf32>,
    %c0_53 = arith.constant 0 : index
    %c0_54 = arith.constant 0 : index
    %c0_55 = arith.constant 0 : index
    %75 = vector.load %arg12[%c0_53, %c0_54, %c0_55] : memref<1x1x128xf32, #tpu.memory_space<vmem>>, vector<1x1x128xf32>
    %76 = arith.addf %75, %59 : vector<1x1x128xf32>
    %c0_56 = arith.constant 0 : index
    %c0_57 = arith.constant 0 : index
    %c0_58 = arith.constant 0 : index
    %77 = vector.load %arg12[%c0_56, %c0_57, %c0_58] : memref<1x1x128xf32, #tpu.memory_space<vmem>>, vector<1x1x128xf32>
    tpu.vector_store %arg12[%c0_56, %c0_57, %c0_58], %76 {strides = array<i32>} : memref<1x1x128xf32, #tpu.memory_space<vmem>>, vector<1x1x128xf32>,
    %78 = arith.extui %5 : i1 to i32
    %c0_i32_59 = arith.constant 0 : i32
    %79 = arith.cmpi ne, %78, %c0_i32_59 : i32
    scf.if %79 {
      %c0_60 = arith.constant 0 : index
      %c0_61 = arith.constant 0 : index
      %c0_62 = arith.constant 0 : index
      %80 = vector.load %arg7[%c0_60, %c0_61, %c0_62] : memref<1x2x128xf32, #tpu.memory_space<vmem>>, vector<1x2x128xf32>
      %81 = vector.shape_cast %80 : vector<1x2x128xf32> to vector<1x1x2x128xf32>
      %cst_63 = arith.constant dense<0.000000e+00> : vector<1xf32>
      %82 = vector.multi_reduction <add>, %81, %cst_63 [1, 2, 3] : vector<1x1x2x128xf32> to vector<1xf32>
      %83 = vector.shape_cast %82 : vector<1xf32> to vector<1x1x1x1xf32>
      %84 = vector.extract %83[0, 0, 0, 0] : f32 from vector<1x1x1x1xf32>
      %c0_64 = arith.constant 0 : index
      %c0_65 = arith.constant 0 : index
      %c0_66 = arith.constant 0 : index
      %85 = vector.load %arg8[%c0_64, %c0_65, %c0_66] : memref<1x2x128xf32, #tpu.memory_space<vmem>>, vector<1x2x128xf32>
      %86 = vector.shape_cast %85 : vector<1x2x128xf32> to vector<1x1x2x128xf32>
      %cst_67 = arith.constant dense<0.000000e+00> : vector<1xf32>
      %87 = vector.multi_reduction <add>, %86, %cst_67 [1, 2, 3] : vector<1x1x2x128xf32> to vector<1xf32>
      %88 = vector.shape_cast %87 : vector<1xf32> to vector<1x1x1x1xf32>
      %89 = vector.extract %88[0, 0, 0, 0] : f32 from vector<1x1x1x1xf32>
      %c0_68 = arith.constant 0 : index
      %c0_69 = arith.constant 0 : index
      %c0_70 = arith.constant 0 : index
      %90 = vector.load %arg9[%c0_68, %c0_69, %c0_70] : memref<1x2x128xf32, #tpu.memory_space<vmem>>, vector<1x2x128xf32>
      %91 = vector.shape_cast %90 : vector<1x2x128xf32> to vector<1x1x2x128xf32>
      %cst_71 = arith.constant dense<0.000000e+00> : vector<1xf32>
      %92 = vector.multi_reduction <add>, %91, %cst_71 [1, 2, 3] : vector<1x1x2x128xf32> to vector<1xf32>
      %93 = vector.shape_cast %92 : vector<1xf32> to vector<1x1x1x1xf32>
      %94 = vector.extract %93[0, 0, 0, 0] : f32 from vector<1x1x1x1xf32>
      %c0_72 = arith.constant 0 : index
      %c0_73 = arith.constant 0 : index
      %c0_74 = arith.constant 0 : index
      %95 = vector.load %arg10[%c0_72, %c0_73, %c0_74] : memref<1x2x128xf32, #tpu.memory_space<vmem>>, vector<1x2x128xf32>
      %96 = vector.shape_cast %95 : vector<1x2x128xf32> to vector<1x1x2x128xf32>
      %cst_75 = arith.constant dense<0.000000e+00> : vector<1xf32>
      %97 = vector.multi_reduction <add>, %96, %cst_75 [1, 2, 3] : vector<1x1x2x128xf32> to vector<1xf32>
      %98 = vector.shape_cast %97 : vector<1xf32> to vector<1x1x1x1xf32>
      %99 = vector.extract %98[0, 0, 0, 0] : f32 from vector<1x1x1x1xf32>
      %c0_76 = arith.constant 0 : index
      %c0_77 = arith.constant 0 : index
      %c0_78 = arith.constant 0 : index
      %100 = vector.load %arg11[%c0_76, %c0_77, %c0_78] : memref<1x1x128xf32, #tpu.memory_space<vmem>>, vector<1x1x128xf32>
      %101 = vector.shape_cast %100 : vector<1x1x128xf32> to vector<1x1x1x128xf32>
      %cst_79 = arith.constant dense<0.000000e+00> : vector<1xf32>
      %102 = vector.multi_reduction <add>, %101, %cst_79 [1, 2, 3] : vector<1x1x1x128xf32> to vector<1xf32>
      %103 = vector.shape_cast %102 : vector<1xf32> to vector<1x1x1x1xf32>
      %104 = vector.extract %103[0, 0, 0, 0] : f32 from vector<1x1x1x1xf32>
      %c0_80 = arith.constant 0 : index
      %c0_81 = arith.constant 0 : index
      %c0_82 = arith.constant 0 : index
      %105 = vector.load %arg12[%c0_80, %c0_81, %c0_82] : memref<1x1x128xf32, #tpu.memory_space<vmem>>, vector<1x1x128xf32>
      %106 = vector.shape_cast %105 : vector<1x1x128xf32> to vector<1x1x1x128xf32>
      %cst_83 = arith.constant dense<0.000000e+00> : vector<1xf32>
      %107 = vector.multi_reduction <add>, %106, %cst_83 [1, 2, 3] : vector<1x1x1x128xf32> to vector<1xf32>
      %108 = vector.shape_cast %107 : vector<1xf32> to vector<1x1x1x1xf32>
      %109 = vector.extract %108[0, 0, 0, 0] : f32 from vector<1x1x1x1xf32>
      %110 = tpu.iota {dimensions = array<i32: 1>} : vector<1x8x128xi32>
      %111 = tpu.iota {dimensions = array<i32: 2>} : vector<1x8x128xi32>
      %c0_i32_84 = arith.constant 0 : i32
      %112 = vector.broadcast %c0_i32_84 : i32 to vector<1x8x128xi32>
      %113 = arith.cmpi eq, %111, %112 : vector<1x8x128xi32>
      %c1_i32_85 = arith.constant 1 : i32
      %114 = vector.broadcast %c1_i32_85 : i32 to vector<1x8x128xi32>
      %115 = arith.cmpi eq, %111, %114 : vector<1x8x128xi32>
      %c2_i32_86 = arith.constant 2 : i32
      %116 = vector.broadcast %c2_i32_86 : i32 to vector<1x8x128xi32>
      %117 = arith.cmpi eq, %111, %116 : vector<1x8x128xi32>
      %c3_i32 = arith.constant 3 : i32
      %118 = vector.broadcast %c3_i32 : i32 to vector<1x8x128xi32>
      %119 = arith.cmpi eq, %111, %118 : vector<1x8x128xi32>
      %c4_i32 = arith.constant 4 : i32
      %120 = vector.broadcast %c4_i32 : i32 to vector<1x8x128xi32>
      %121 = arith.cmpi eq, %111, %120 : vector<1x8x128xi32>
      %c5_i32 = arith.constant 5 : i32
      %122 = vector.broadcast %c5_i32 : i32 to vector<1x8x128xi32>
      %123 = arith.cmpi eq, %111, %122 : vector<1x8x128xi32>
      %cst_87 = arith.constant 0.000000e+00 : f32
      %124 = vector.broadcast %109 : f32 to vector<1x8x128xf32>
      %125 = vector.broadcast %cst_87 : f32 to vector<1x8x128xf32>
      %126 = arith.select %123, %124, %125 : vector<1x8x128xi1>, vector<1x8x128xf32>
      %127 = vector.broadcast %104 : f32 to vector<1x8x128xf32>
      %128 = arith.select %121, %127, %126 : vector<1x8x128xi1>, vector<1x8x128xf32>
      %129 = vector.broadcast %99 : f32 to vector<1x8x128xf32>
      %130 = arith.select %119, %129, %128 : vector<1x8x128xi1>, vector<1x8x128xf32>
      %131 = vector.broadcast %94 : f32 to vector<1x8x128xf32>
      %132 = arith.select %117, %131, %130 : vector<1x8x128xi1>, vector<1x8x128xf32>
      %133 = vector.broadcast %89 : f32 to vector<1x8x128xf32>
      %134 = arith.select %115, %133, %132 : vector<1x8x128xi1>, vector<1x8x128xf32>
      %135 = vector.broadcast %84 : f32 to vector<1x8x128xf32>
      %136 = arith.select %113, %135, %134 : vector<1x8x128xi1>, vector<1x8x128xf32>
      %c0_i32_88 = arith.constant 0 : i32
      %137 = vector.broadcast %c0_i32_88 : i32 to vector<1x8x128xi32>
      %138 = arith.cmpi eq, %110, %137 : vector<1x8x128xi32>
      %cst_89 = arith.constant 0.000000e+00 : f32
      %139 = vector.broadcast %cst_89 : f32 to vector<1x8x128xf32>
      %140 = arith.select %138, %136, %139 : vector<1x8x128xi1>, vector<1x8x128xf32>
      %c0_90 = arith.constant 0 : index
      %c0_91 = arith.constant 0 : index
      %c0_92 = arith.constant 0 : index
      %141 = vector.load %arg6[%c0_90, %c0_91, %c0_92] : memref<1x8x128xf32, #tpu.memory_space<vmem>>, vector<1x8x128xf32>
      tpu.vector_store %arg6[%c0_90, %c0_91, %c0_92], %140 {strides = array<i32>} : memref<1x8x128xf32, #tpu.memory_space<vmem>>, vector<1x8x128xf32>,
    } else {
    }
    return
  }
  func.func @transform_0(%arg0: i32, %arg1: i32, %arg2: i32) -> (i32, i32, i32) {
    %c1_i32 = arith.constant 1 : i32
    %0 = arith.muli %arg0, %c1_i32 : i32
    %1 = arith.addi %0, %arg2 : i32
    %c0_i32 = arith.constant 0 : i32
    %c0_i32_0 = arith.constant 0 : i32
    return %arg1, %c0_i32, %1 : i32, i32, i32
  }
  func.func @transform_1(%arg0: i32, %arg1: i32, %arg2: i32) -> (i32, i32, i32) {
    %c1_i32 = arith.constant 1 : i32
    %0 = arith.muli %arg0, %c1_i32 : i32
    %1 = arith.addi %0, %arg2 : i32
    %c0_i32 = arith.constant 0 : i32
    %c0_i32_0 = arith.constant 0 : i32
    return %arg1, %c0_i32, %1 : i32, i32, i32
  }
  func.func @transform_2(%arg0: i32, %arg1: i32, %arg2: i32) -> (i32, i32, i32) {
    %c1_i32 = arith.constant 1 : i32
    %0 = arith.muli %arg0, %c1_i32 : i32
    %1 = arith.addi %0, %arg2 : i32
    %c0_i32 = arith.constant 0 : i32
    %c0_i32_0 = arith.constant 0 : i32
    return %arg1, %c0_i32, %1 : i32, i32, i32
  }
  func.func @transform_3(%arg0: i32, %arg1: i32, %arg2: i32) -> (i32, i32, i32) {
    %c0_i32 = arith.constant 0 : i32
    %c0_i32_0 = arith.constant 0 : i32
    %c0_i32_1 = arith.constant 0 : i32
    return %arg0, %c0_i32, %c0_i32_0 : i32, i32, i32
  }
}

</mosaic_0001>

<bundles_post_ra>
// kernel: bm_loss.1
= control target key start
LH: loop header
LB: loop body
LE: loop exit
PB: predicated region body
PF: predicated region fallthrough
CT: control target
= control target key end

     0   :  { %s692_s12 = smov 0   ;;  %s694_s13 = smov 0   ;;  %s745_s0 = inlined_call_operand.vmem [shape: f32[2,4,256], index: 0, kind: input, shape index: {}]   ;;  %s746_s1 = inlined_call_operand.vmem [shape: f32[2,2,256], index: 1, kind: input, shape index: {}]   ;;  %s747_s2 = inlined_call_operand.vmem [shape: f32[2,1,256], index: 2, kind: input, shape index: {}]   ;;  %s748_s3 = inlined_call_operand.vmem [shape: f32[1,8,128], index: 3, kind: output, shape index: {}]  }
   0x1   :  { %s696_s14 = smov 0  }
   0x2 LB: > { %s28_s15 = sadd.s32 1, %s665_s13  ;;  %p592_p0 = scmp.ge.s32.totalorder %s669_s14, 1  ;;  %s669_s14 = sphi %s696_s14, %s13_s14   ;;  %s665_s13 = sphi %s694_s13, %s750_s13   ;;  %s661_s12 = sphi %s692_s12, %s749_s12  }
   0x3   : > { %p30_p1 = scmp.ge.s32.totalorder %s28_s15, 2  ;;  %p208_p2 = scmp.lt.s32.totalorder %s669_s14, 3 }
   0x5   : > { %s752_s15 = smov (%p30_p1, %s28_s15), 0  ;;  %p209_p3 = pnand %p592_p0, %p208_p2 }
   0x6   : > { %p257_p4 = scmp.lt.s32.totalorder (!%p209_p3), %s661_s12, 1  ;;  %p294_p5 = scmp.eq.s32.totalorder (!%p209_p3), %s661_s12, 0 }
   0x7   : > { %212 = sbr.rel (%p209_p3) target bundleno = 267 (0x10b), region = 32  ;;  %p298_p6 = scmp.eq.s32.totalorder (!%p209_p3), %s661_s12, 1 }
   0xe   : > { %s258_s16 = scalar_select %p257_p4, %s661_s12, 1 }
   0xf   : > { %302 = sbr.rel (!%p294_p5) target bundleno = 22 (0x16), region = 36  ;;  %v671_v0 = vmov (%p294_p5), 0.0  }
  0x10   : > { %s606_s17 = sshll.u32 %s258_s16, 3  ;;  %s607_s18 = sshll.u32 %s258_s16, 2  ;;  %303 = vst [vmem:[#allocation2] sm:$0x3] (%p294_p5), %v671_v0  ;;  %304 = vst [vmem:[#allocation3] sm:$0x3] (%p294_p5), %v671_v0 }
  0x11   : > { %s264_s21 = scalar_lea.vmem %s745_s0, %s606_s17  ;;  %s276_s24 = scalar_lea.vmem %s746_s1, %s607_s18  ;;  %305 = vst [vmem:[#allocation4] sm:$0x3] (%p294_p5), %v671_v0  ;;  %306 = vst [vmem:[#allocation5] sm:$0x3] (%p294_p5), %v671_v0 }
  0x12   : > { %s597_s25 = sshll.u32 %s258_s16, 1  ;;  %307 = vst [vmem:[#allocation6] sm:$0x1] (%p294_p5), %v671_v0  ;;  %308 = vst [vmem:[#allocation7] sm:$0x1] (%p294_p5), %v671_v0 }
  0x13   : > { %s287_s28 = scalar_lea.vmem %s747_s2, %s597_s25 }
  0x16 PF: > { %v309_v1 = vld [vmem:[%s264_s21] sm:$0xc]  ;;  %v311_v2 = vld [vmem:[%s287_s28] sm:$0x1]  ;;  %v314_v3 = vlaneseq  ;;  %v600_v4 = vld [vmem:[%s264_s21 + $0x4] sm:$0xc] }
  0x17   : > { %v320_v5 = vrot.slane %v309_v1, 2  ;;  %v602_v6 = vld [vmem:[%s287_s28 + $0x1] sm:$0x1]  ;;  %v324_v7 = vmul.f32 %v309_v1, %v309_v1  ;;  %v357_v8 = vmul.f32 %v600_v4, %v600_v4  ;;  %v312_v11 = vsub.f32 1.0, %v311_v2  ;;  %v601_v15 = vld [vmem:[%s276_s24 + $0x2] sm:$0x3] }
  0x18   : > { %v726_v9 = vshrl.u32 %v314_v3, 7  ;;  %v310_v10 = vld [vmem:[%s276_s24] sm:$0x3]  ;;  %v369_v12 = vadd.f32 %v602_v6, %v311_v2  ;;  %v337_v13 = vmul.f32 %v311_v2, %v311_v2  ;;  %v345_v16 = vsub.f32 1.0, %v602_v6  ;;  %v375_v21 = vld [vmem:[#allocation3] sm:$0x3] }
  0x19   : > { %v358_v14 = vadd.f32 %v357_v8, %v324_v7  ;;  %v334_v17 = vmul.f32 %v310_v10, %v310_v10  ;;  %v370_v18 = vmul.f32 %v602_v6, %v602_v6  ;;  %v353_v20 = vrot.slane %v600_v4, 2  ;;  %v387_v23 = vld [vmem:[#allocation6] sm:$0x1]  ;;  %v390_v27 = vld [vmem:[#allocation7] sm:$0x1] }
  0x1a   : > { %v316_v19 = vsub.s32 0, %v726_v9  ;;  %v367_v22 = vmul.f32 %v601_v15, %v601_v15  ;;  %v388_v25 = vadd.f32 %v387_v23, %v369_v12  ;;  %v384_v32 = vld [vmem:[#allocation5] sm:$0x3]  ;;  %v372_v40 = vld [vmem:[#allocation2] sm:$0x3]  ;;  %vm396_vm0 = vcmask (%p298_p6), 1041408  }
  0x1b   : > { %v377_v24 = vrot.slane %v358_v14, 2  ;;  %v371_v26 = vadd.f32 %v370_v18, %v337_v13  ;;  %v381_v41 = vld [vmem:[#allocation4] sm:$0x3]  ;;  %vm441_vm1 = vcmask (%p298_p6), 1040384   ;;  %vm485_vm8 = vcmp.eq.s32.totalorder (%p298_p6), %v726_v9, 0 }
  0x1c   : > { %v317_v28 = vrot.slane %v311_v2, %v316_v19  ;;  %v350_v29 = vrot.slane %v602_v6, %v316_v19  ;;  %v330_v30 = vrot.slane %v312_v11, %v316_v19  ;;  %v363_v31 = vrot.slane %v345_v16, %v316_v19  ;;  %389 = vst [vmem:[#allocation6] sm:$0x1] %v388_v25 }
  0x1d   : > { %v379_v33 = vadd.f32 %v377_v24, %v375_v21  ;;  %v368_v34 = vadd.f32 %v367_v22, %v334_v17  ;;  %v391_v35 = vadd.f32 %v390_v27, %v371_v26 }
  0x1e   : > { %v322_v36 = vmul.f32 %v320_v5, %v317_v28  ;;  %v355_v37 = vmul.f32 %v353_v20, %v350_v29  ;;  %v332_v38 = vmul.f32 %v330_v30, %v310_v10  ;;  %v365_v39 = vmul.f32 %v601_v15, %v363_v31  ;;  %394 = sbr.rel (!%p298_p6) target bundleno = 267 (0x10b), region = 40 }
  0x1f   : > { %380 = vst [vmem:[#allocation3] sm:$0x3] %v379_v33  ;;  %v385_v42 = vadd.f32 %v384_v32, %v368_v34  ;;  %392 = vst [vmem:[#allocation7] sm:$0x1] %v391_v35 }
  0x20   : > { %v356_v43 = vadd.f32 %v355_v37, %v322_v36  ;;  %v366_v44 = vadd.f32 %v365_v39, %v332_v38  ;;  %v466_v39 = vand.u32 (%p298_p6), 127, %v314_v3 }
  0x21   : > { %386 = vst [vmem:[#allocation5] sm:$0x3] %v385_v42 }
  0x22   : > { %v373_v45 = vadd.f32 %v372_v40, %v356_v43  ;;  %v382_v46 = vadd.f32 %v381_v41, %v366_v44  ;;  %vm472_vm2 = vcmp.eq.s32.totalorder (%p298_p6), %v466_v39, 5  ;;  %vm471_vm3 = vcmp.eq.s32.totalorder (%p298_p6), %v466_v39, 4 }
  0x23   : > { %v440_v56 = vld [vmem:[#allocation6] sm:$0x1] (%p298_p6)  ;;  %vm470_vm4 = vcmp.eq.s32.totalorder (%p298_p6), %v466_v39, 3  ;;  %vm469_vm5 = vcmp.eq.s32.totalorder (%p298_p6), %v466_v39, 2  ;;  %vm468_vm6 = vcmp.eq.s32.totalorder (%p298_p6), %v466_v39, 1  ;;  %vm467_vm7 = vcmp.eq.s32.totalorder (%p298_p6), %v466_v39, 0 }
  0x24   : > { %374 = vst [vmem:[#allocation2] sm:$0x3] %v373_v45  ;;  %383 = vst [vmem:[#allocation4] sm:$0x3] %v382_v46  ;;  %v442_v58 = vsel (%p298_p6), %vm441_vm1, %v440_v56, 0.0 }
  0x26   : > { %v407_v52 = vld [vmem:[#allocation3] sm:$0x3]  ;;  %v452_v55 = vld [vmem:[#allocation7] sm:$0x1] }
  0x27   : > { %v408_v54 = vsel %vm396_vm0, %v407_v52, 0.0  ;;  %v453_v57 = vsel %vm441_vm1, %v452_v55, 0.0 }
  0x28   : > { %v429_v51 = vld [vmem:[#allocation5] sm:$0x3] }
  0x29   : > { %v430_v53 = vsel %vm396_vm0, %v429_v51, 0.0 }
  0x2b   : > { %v418_v47 = vld [vmem:[#allocation4] sm:$0x3]  ;;  %v395_v48 = vld [vmem:[#allocation2] sm:$0x3] }
  0x2c   : > { %v419_v49 = vsel %vm396_vm0, %v418_v47, 0.0  ;;  %v397_v50 = vsel %vm396_vm0, %v395_v48, 0.0 }
  0x2d   : > { %420 = vadd.xlane.f32.xlu1 %v419_v49  ;;  %398 = vadd.xlane.f32.xlu0 %v397_v50 }
  0x31   : > { %431 = vadd.xlane.f32.xlu1 %v430_v53  ;;  %409 = vadd.xlane.f32.xlu0 %v408_v54 }
  0x35   : > { %454 = vadd.xlane.f32.xlu1 %v453_v57  ;;  %443 = vadd.xlane.f32.xlu0 %v442_v58 }
  0xba   : > { %v421_v59 = vpop.xlane.xlu1 %420  ;;  %v399_v60 = vpop.xlane.xlu0 %398 }
  0xbb   : > { %v422_v61 = vrot.slane %v421_v59, 4  ;;  %v400_v62 = vrot.slane %v399_v60, 4 }
  0xbd   : > { %v423_v63 = vadd.f32 %v422_v61, %v421_v59  ;;  %v401_v0 = vadd.f32 %v400_v62, %v399_v60 }
  0xbe   : > { %v432_v1 = vpop.xlane.xlu1 %431  ;;  %v410_v2 = vpop.xlane.xlu0 %409 }
  0xbf   : > { %v424_v4 = vrot.slane %v423_v63, 2  ;;  %v402_v5 = vrot.slane %v401_v0, 2  ;;  %v433_v6 = vrot.slane %v432_v1, 4  ;;  %v411_v7 = vrot.slane %v410_v2, 4 }
  0xc1   : > { %v434_v8 = vadd.f32 %v433_v6, %v432_v1  ;;  %v412_v10 = vadd.f32 %v411_v7, %v410_v2  ;;  %v403_v11 = vadd.f32 %v402_v5, %v401_v0  ;;  %v425_v14 = vadd.f32 %v424_v4, %v423_v63 }
  0xc2   : > { %v455_v12 = vpop.xlane.xlu1 %454  ;;  %v444_v13 = vpop.xlane.xlu0 %443 }
  0xc3   : > { %v435_v15 = vrot.slane %v434_v8, 2  ;;  %v413_v16 = vrot.slane %v412_v10, 2  ;;  %v456_v17 = vrot.slane %v455_v12, 4  ;;  %v445_v18 = vrot.slane %v444_v13, 4 }
  0xc4   : > { %v404_v19 = vrot.slane %v403_v11, 1  ;;  %v426_v25 = vrot.slane %v425_v14, 1 }
  0xc5   : > { %v457_v20 = vadd.f32 %v456_v17, %v455_v12  ;;  %v446_v21 = vadd.f32 %v445_v18, %v444_v13  ;;  %v414_v22 = vadd.f32 %v413_v16, %v412_v10  ;;  %v436_v23 = vadd.f32 %v435_v15, %v434_v8 }
  0xc6   : > { %v405_v24 = vadd.f32 %v404_v19, %v403_v11  ;;  %v427_v34 = vadd.f32 %v426_v25, %v425_v14 }
  0xc7   : > { %v458_v26 = vrot.slane %v457_v20, 2  ;;  %v447_v27 = vrot.slane %v446_v21, 2  ;;  %v415_v28 = vrot.slane %v414_v22, 1  ;;  %v437_v29 = vrot.slane %v436_v23, 1 }
  0xc8   : > { %610 = vpush %v405_v24 }
  0xc9   : > { %v459_v30 = vadd.f32 %v458_v26, %v457_v20  ;;  %v448_v31 = vadd.f32 %v447_v27, %v446_v21  ;;  %v416_v32 = vadd.f32 %v415_v28, %v414_v22  ;;  %v438_v33 = vadd.f32 %v437_v29, %v436_v23 }
  0xcb   : > { %612 = vpush %v416_v32  ;;  %v449_v35 = vrot.slane %v448_v31, 1  ;;  %v460_v36 = vrot.slane %v459_v30, 1 }
  0xcc   : > { %614 = vpush %v427_v34 }
  0xcd   : > { %616 = vpush %v438_v33  ;;  %v450_v37 = vadd.f32 %v449_v35, %v448_v31  ;;  %v461_v38 = vadd.f32 %v460_v36, %v459_v30 }
  0xcf   : > { %618 = vpush %v450_v37 }
  0xd0   : > { %620 = vpush %v461_v38 }
  0xf9   : > { %s611_s29 = spop %610 }
  0xfa   : > { %v483_v3 = vstv %s611_s29 }
  0xfc   : > { %s613_s30 = spop %612 }
  0xfd   : > { %s615_s4 = spop %614  ;;  %v481_v47 = vstv %s613_s30 }
  0xfe   : > { %s617_s5 = spop %616  ;;  %v479_v45 = vstv %s615_s4 }
  0xff   : > { %v477_v43 = vstv %s617_s5 }
 0x100   : > { %s619_s6 = spop %618 }
 0x101   : > { %v475_v40 = vstv %s619_s6  ;;  %s621_s7 = spop %620 }
 0x102   : > { %v473_v41 = vstv %s621_s7 }
 0x103   : > { %v474_v42 = vsel %vm472_vm2, %v473_v41, 0.0 }
 0x104   : > { %v476_v44 = vsel %vm471_vm3, %v475_v40, %v474_v42 }
 0x105   : > { %v478_v46 = vsel %vm470_vm4, %v477_v43, %v476_v44 }
 0x106   : > { %v480_v48 = vsel %vm469_vm5, %v479_v45, %v478_v46 }
 0x107   : > { %v482_v49 = vsel %vm468_vm6, %v481_v47, %v480_v48 }
 0x108   : > { %v484_v50 = vsel %vm467_vm7, %v483_v3, %v482_v49 }
 0x109   : > { %v486_v51 = vsel %vm485_vm8, %v484_v50, 0.0 }
 0x10a   : > { %487 = vst [vmem:[%s748_s3] sm:$0xff] %v486_v51 }
 0x10b PF: > { %s13_s14 = sadd.s32 1, %s669_s14   ;;  %s749_s12 = smov %s665_s13 }
 0x10c   : > { %p10_p7 = scmp.ge.s32.totalorder %s13_s14, 4   ;;  %s750_s13 = smov %s752_s15 }
 0x10e   :  { %12 = sbr.rel (!%p10_p7) target bundleno = 2 (0x2), region = 79 }

</bundles_post_ra>
